<compile_context>
chip_gen: v6e
topology: v6e:2x2x1
jax: 0.10.0
libtpu: 0.0.40
codegen_flags: <defaults>
</compile_context>

<pallas_src>
import jax
import jax.numpy as jnp
from jax.experimental import pallas as pl
from jax.experimental.pallas import tpu as pltpu


def mlp_head_kernel(x_ref, w1_ref, b1_ref, w2_ref, b2_ref, o_ref, acc_ref):
    j = pl.program_id(1)

    @pl.when(j == 0)
    def _():
        # Initialize the accumulator with the second-layer bias (broadcast over rows).
        acc_ref[...] = jnp.broadcast_to(b2_ref[...], acc_ref.shape)

    # bf16 MXU operands, f32 accumulation; elementwise math in f32.
    x = x_ref[...].astype(jnp.bfloat16)
    h = jnp.dot(x, w1_ref[...], preferred_element_type=jnp.float32) + b1_ref[...]
    h = jnp.maximum(h, 0.0)
    acc_ref[...] += jnp.dot(h.astype(jnp.bfloat16), w2_ref[...],
                            preferred_element_type=jnp.float32)

    @pl.when(j == pl.num_programs(1) - 1)
    def _():
        # F.normalize(p=2, dim=1): y / max(||y||, 1e-12) == y * rsqrt(max(||y||^2, 1e-24)).
        # rsqrt lands on the EUP slot; padded (zero) columns contribute 0 to the norm.
        y = acc_ref[...]
        sq = jnp.sum(y * y, axis=1, keepdims=True)
        inv = jax.lax.rsqrt(jnp.maximum(sq, 1e-24))
        o_ref[...] = (y * inv).astype(o_ref.dtype)


def _round_up(x, m):
    return ((x + m - 1) // m) * m


def _vmem_budget():
    cap = 64 * 1024 * 1024  # conservative fallback = v7x per-TC VMEM
    try:
        info = pltpu.get_tpu_info()
        cap = int(getattr(info, "vmem_capacity_bytes", cap))
    except Exception:
        pass
    return int(cap * 0.8)


def _vmem_est(tb, th, dim_in, dim_feat_p, out_bytes):
    bf16, f32 = 2, 4
    # BlockSpec inputs are double-buffered by default -> count x2.
    weights = 2 * (dim_in * th * bf16 + th * dim_feat_p * bf16 + th * f32 + dim_feat_p * f32)
    acts = 2 * tb * dim_in * f32 + 2 * tb * dim_feat_p * out_bytes
    acc = tb * dim_feat_p * f32
    # in-kernel temporaries: h (f32 + bf16 copy), x bf16 copy
    inter = tb * th * (f32 + bf16) + tb * dim_in * bf16
    return weights + acts + acc + inter


def _plan_tiles(B, dim_in, dim_h_p, dim_feat_p, out_bytes, budget):
    """Largest batch tile (tb) that fits VMEM; for each tb, the largest dim_h tile (th)."""
    th_cands = sorted({t for t in (dim_h_p, 4096, 2048, 1024, 512, 256, 128)
                       if t <= dim_h_p and dim_h_p % t == 0}, reverse=True)
    full_b = _round_up(max(B, 8), 8)
    tb_cands = [full_b] + [t for t in (2048, 1024, 512, 256, 128, 64, 32, 16, 8) if t < full_b]
    limit = int(0.75 * budget)  # headroom for compiler-internal scratch
    for tb in tb_cands:
        for th in th_cands:
            if _vmem_est(tb, th, dim_in, dim_feat_p, out_bytes) <= limit:
                return tb, th
    return 8, th_cands[-1]


def mlp_head(x, w1, b1, w2, b2):
    """x: (B, dim_in); w1: (dim_in, dim_h); b1: (1, dim_h); w2: (dim_h, dim_feat); b2: (1, dim_feat)."""
    B, dim_in = x.shape
    dim_h = w1.shape[1]
    dim_feat = w2.shape[1]
    out_dtype = x.dtype
    out_bytes = jnp.dtype(out_dtype).itemsize

    # Lane-dense padded dims (multiples of 128); zero-padding is exact under ReLU + L2 normalize.
    dim_h_p = _round_up(dim_h, 128)
    dim_feat_p = _round_up(dim_feat, 128)

    budget = _vmem_budget()
    tb, th = _plan_tiles(B, dim_in, dim_h_p, dim_feat_p, out_bytes, budget)
    B_p = _round_up(B, tb)
    nb, nh = B_p // tb, dim_h_p // th

    # One-time wrapper-side padding / bf16 weight conversion (no-ops when already aligned).
    x_p = jnp.pad(x, ((0, B_p - B), (0, 0)))
    w1_p = jnp.pad(w1, ((0, 0), (0, dim_h_p - dim_h))).astype(jnp.bfloat16)
    b1_p = jnp.pad(b1, ((0, 0), (0, dim_h_p - dim_h))).astype(jnp.float32)
    w2_p = jnp.pad(w2, ((0, dim_h_p - dim_h), (0, dim_feat_p - dim_feat))).astype(jnp.bfloat16)
    b2_p = jnp.pad(b2, ((0, 0), (0, dim_feat_p - dim_feat))).astype(jnp.float32)

    cost = pl.CostEstimate(
        flops=2 * B_p * (dim_in * dim_h_p + dim_h_p * dim_feat_p),
        transcendentals=B_p,
        bytes_accessed=(x_p.size * 4 + w1_p.size * 2 + w2_p.size * 2
                        + b1_p.size * 4 + b2_p.size * 4 + B_p * dim_feat_p * out_bytes),
    )

    out = pl.pallas_call(
        mlp_head_kernel,
        out_shape=jax.ShapeDtypeStruct((B_p, dim_feat_p), out_dtype),
        grid_spec=pltpu.PrefetchScalarGridSpec(
            num_scalar_prefetch=0,
            grid=(nb, nh),
            in_specs=[
                pl.BlockSpec((tb, dim_in), lambda i, j: (i, 0)),        # x batch tile
                pl.BlockSpec((dim_in, th), lambda i, j: (0, j)),        # W1 (bf16), tiled over dim_h
                pl.BlockSpec((1, th), lambda i, j: (0, j)),             # b1 slice
                pl.BlockSpec((th, dim_feat_p), lambda i, j: (j, 0)),    # W2 (bf16), tiled over dim_h
                pl.BlockSpec((1, dim_feat_p), lambda i, j: (0, 0)),     # b2
            ],
            out_specs=pl.BlockSpec((tb, dim_feat_p), lambda i, j: (i, 0)),  # lane-dense output
            scratch_shapes=[pltpu.VMEM((tb, dim_feat_p), jnp.float32)],     # f32 accumulator
        ),
        compiler_params=pltpu.CompilerParams(
            dimension_semantics=("parallel", "arbitrary"),
            vmem_limit_bytes=budget,
        ),
        cost_estimate=cost,
    )(x_p, w1_p, b1_p, w2_p, b2_p)

    return out[:B, :dim_feat]


def reference(x, w1, b1, w2, b2):
    h = jnp.maximum(x @ w1 + b1, 0.0)
    y = h @ w2 + b2
    n = jnp.sqrt(jnp.sum(y * y, axis=1, keepdims=True))
    return y / jnp.maximum(n, 1e-12)


if __name__ == "__main__":
    # MLPHead(dim_in=32, dim_feat=16, dim_h=None -> 32).
    B, dim_in, dim_feat = 256, 32, 16
    dim_h = dim_in  # dim_h defaults to dim_in in the PyTorch module

    key = jax.random.PRNGKey(0)
    k_x, k_w1, k_b1, k_w2, k_b2 = jax.random.split(key, 5)

    x = jax.random.normal(k_x, (B, dim_in), dtype=jnp.float32)
    # Deterministic synthetic parameters (nn.Linear-like scale)
    w1 = jax.random.uniform(k_w1, (dim_in, dim_h), jnp.float32,
                            minval=-1.0, maxval=1.0) / jnp.sqrt(dim_in)
    b1 = jax.random.uniform(k_b1, (1, dim_h), jnp.float32,
                            minval=-1.0, maxval=1.0) / jnp.sqrt(dim_in)
    w2 = jax.random.uniform(k_w2, (dim_h, dim_feat), jnp.float32,
                            minval=-1.0, maxval=1.0) / jnp.sqrt(dim_h)
    b2 = jax.random.uniform(k_b2, (1, dim_feat), jnp.float32,
                            minval=-1.0, maxval=1.0) / jnp.sqrt(dim_h)

    out = mlp_head(x, w1, b1, w2, b2)
    out = jax.block_until_ready(out)

    ref = reference(x, w1, b1, w2, b2)
    assert out.shape == (B, dim_feat)
    # bf16 MXU operands => looser tolerance (accumulation and normalize stay f32)
    assert jnp.allclose(out, ref, atol=2e-2, rtol=2e-2), "mismatch vs reference"

    print("KERNEL_OK")
</pallas_src>

<mosaic_0001>
module attributes {stable_mosaic.version = 11 : i64} {
  func.func @mlp_head_kernel(%arg0: i32, %arg1: i32, %arg2: memref<256x32xf32, #tpu.memory_space<vmem>>, %arg3: memref<32x128xbf16, #tpu.memory_space<vmem>>, %arg4: memref<1x128xf32, #tpu.memory_space<vmem>>, %arg5: memref<128x128xbf16, #tpu.memory_space<vmem>>, %arg6: memref<1x128xf32, #tpu.memory_space<vmem>>, %arg7: memref<256x128xf32, #tpu.memory_space<vmem>>, %arg8: memref<256x128xf32, #tpu.memory_space<vmem>>) attributes {dimension_semantics = [#tpu.dimension_semantics<parallel>, #tpu.dimension_semantics<arbitrary>], iteration_bounds = array<i64: 1, 1>, scalar_prefetch = 0 : i64, scratch_operands = 1 : i64, tpu.core_type = #tpu.core_type<tc>, window_params = [{transform_indices = @transform_0, window_bounds = array<i64: 256, 32>}, {transform_indices = @transform_1, window_bounds = array<i64: 32, 128>}, {transform_indices = @transform_2, window_bounds = array<i64: 1, 128>}, {transform_indices = @transform_3, window_bounds = array<i64: 128, 128>}, {pipeline_mode = #tpu.pipeline_mode<synchronous>, transform_indices = @transform_4, window_bounds = array<i64: 1, 128>}, {transform_indices = @transform_5, window_bounds = array<i64: 256, 128>}]} {
    %c0_i32 = arith.constant 0 : i32
    %0 = arith.cmpi eq, %arg1, %c0_i32 : i32
    %1 = arith.extui %0 : i1 to i32
    %c0_i32_0 = arith.constant 0 : i32
    %2 = arith.cmpi ne, %1, %c0_i32_0 : i32
    scf.if %2 {
      %c0_16 = arith.constant 0 : index
      %c0_17 = arith.constant 0 : index
      %21 = vector.load %arg6[%c0_16, %c0_17] : memref<1x128xf32, #tpu.memory_space<vmem>>, vector<1x128xf32>
      %22 = vector.shape_cast %21 : vector<1x128xf32> to vector<1x128xf32>
      %23 = vector.broadcast %22 : vector<1x128xf32> to vector<256x128xf32>
      %c0_18 = arith.constant 0 : index
      %c0_19 = arith.constant 0 : index
      %24 = vector.load %arg8[%c0_18, %c0_19] : memref<256x128xf32, #tpu.memory_space<vmem>>, vector<256x128xf32>
      tpu.vector_store %arg8[%c0_18, %c0_19], %23 {strides = array<i32>} : memref<256x128xf32, #tpu.memory_space<vmem>>, vector<256x128xf32>,
    } else {
    }
    %c0 = arith.constant 0 : index
    %c0_1 = arith.constant 0 : index
    %3 = vector.load %arg2[%c0, %c0_1] : memref<256x32xf32, #tpu.memory_space<vmem>>, vector<256x32xf32>
    %4 = arith.truncf %3 : vector<256x32xf32> to vector<256x32xbf16>
    %c0_2 = arith.constant 0 : index
    %c0_3 = arith.constant 0 : index
    %5 = vector.load %arg3[%c0_2, %c0_3] : memref<32x128xbf16, #tpu.memory_space<vmem>>, vector<32x128xbf16>
    %cst = arith.constant dense<0.000000e+00> : vector<256x128xf32>
    %6 = tpu.matmul %4, %5, %cst {dimension_numbers = #tpu.dot_dimension_numbers<[1], [0], [0], [1], [0, 0, 1, 1], [], []>} : vector<256x32xbf16>, vector<32x128xbf16>, vector<256x128xf32> -> vector<256x128xf32>
    %c0_4 = arith.constant 0 : index
    %c0_5 = arith.constant 0 : index
    %7 = vector.load %arg4[%c0_4, %c0_5] : memref<1x128xf32, #tpu.memory_space<vmem>>, vector<1x128xf32>
    %8 = vector.broadcast %7 : vector<1x128xf32> to vector<256x128xf32>
    %9 = arith.addf %6, %8 : vector<256x128xf32>
    %cst_6 = arith.constant 0.000000e+00 : f32
    %10 = vector.broadcast %cst_6 : f32 to vector<256x128xf32>
    %11 = arith.maximumf %9, %10 : vector<256x128xf32>
    %c0_7 = arith.constant 0 : index
    %c0_8 = arith.constant 0 : index
    %12 = vector.load %arg8[%c0_7, %c0_8] : memref<256x128xf32, #tpu.memory_space<vmem>>, vector<256x128xf32>
    %13 = arith.truncf %11 : vector<256x128xf32> to vector<256x128xbf16>
    %c0_9 = arith.constant 0 : index
    %c0_10 = arith.constant 0 : index
    %14 = vector.load %arg5[%c0_9, %c0_10] : memref<128x128xbf16, #tpu.memory_space<vmem>>, vector<128x128xbf16>
    %cst_11 = arith.constant dense<0.000000e+00> : vector<256x128xf32>
    %15 = tpu.matmul %13, %14, %cst_11 {dimension_numbers = #tpu.dot_dimension_numbers<[1], [0], [0], [1], [0, 0, 1, 1], [], []>} : vector<256x128xbf16>, vector<128x128xbf16>, vector<256x128xf32> -> vector<256x128xf32>
    %16 = arith.addf %12, %15 : vector<256x128xf32>
    %c0_12 = arith.constant 0 : index
    %c0_13 = arith.constant 0 : index
    %17 = vector.load %arg8[%c0_12, %c0_13] : memref<256x128xf32, #tpu.memory_space<vmem>>, vector<256x128xf32>
    tpu.vector_store %arg8[%c0_12, %c0_13], %16 {strides = array<i32>} : memref<256x128xf32, #tpu.memory_space<vmem>>, vector<256x128xf32>,
    %c0_i32_14 = arith.constant 0 : i32
    %18 = arith.cmpi eq, %arg1, %c0_i32_14 : i32
    %19 = arith.extui %18 : i1 to i32
    %c0_i32_15 = arith.constant 0 : i32
    %20 = arith.cmpi ne, %19, %c0_i32_15 : i32
    scf.if %20 {
      %c0_16 = arith.constant 0 : index
      %c0_17 = arith.constant 0 : index
      %21 = vector.load %arg8[%c0_16, %c0_17] : memref<256x128xf32, #tpu.memory_space<vmem>>, vector<256x128xf32>
      %22 = arith.mulf %21, %21 : vector<256x128xf32>
      %cst_18 = arith.constant dense<0.000000e+00> : vector<256xf32>
      %23 = vector.multi_reduction <add>, %22, %cst_18 [1] : vector<256x128xf32> to vector<256xf32>
      %24 = vector.shape_cast %23 : vector<256xf32> to vector<256x1xf32>
      %cst_19 = arith.constant 1.000000e-24 : f32
      %25 = vector.broadcast %cst_19 : f32 to vector<256x1xf32>
      %26 = arith.maximumf %24, %25 : vector<256x1xf32>
      %27 = math.rsqrt %26 : vector<256x1xf32>
      %28 = vector.broadcast %27 : vector<256x1xf32> to vector<256x128xf32>
      %29 = arith.mulf %21, %28 : vector<256x128xf32>
      %c0_20 = arith.constant 0 : index
      %c0_21 = arith.constant 0 : index
      %30 = vector.load %arg7[%c0_20, %c0_21] : memref<256x128xf32, #tpu.memory_space<vmem>>, vector<256x128xf32>
      tpu.vector_store %arg7[%c0_20, %c0_21], %29 {strides = array<i32>} : memref<256x128xf32, #tpu.memory_space<vmem>>, vector<256x128xf32>,
    } else {
    }
    return
  }
  func.func @transform_0(%arg0: i32, %arg1: i32) -> (i32, i32) {
    %c0_i32 = arith.constant 0 : i32
    %c0_i32_0 = arith.constant 0 : i32
    return %arg0, %c0_i32 : i32, i32
  }
  func.func @transform_1(%arg0: i32, %arg1: i32) -> (i32, i32) {
    %c0_i32 = arith.constant 0 : i32
    %c0_i32_0 = arith.constant 0 : i32
    return %c0_i32, %arg1 : i32, i32
  }
  func.func @transform_2(%arg0: i32, %arg1: i32) -> (i32, i32) {
    %c0_i32 = arith.constant 0 : i32
    %c0_i32_0 = arith.constant 0 : i32
    return %c0_i32, %arg1 : i32, i32
  }
  func.func @transform_3(%arg0: i32, %arg1: i32) -> (i32, i32) {
    %c0_i32 = arith.constant 0 : i32
    %c0_i32_0 = arith.constant 0 : i32
    return %arg1, %c0_i32 : i32, i32
  }
  func.func @transform_4(%arg0: i32, %arg1: i32) -> (i32, i32) {
    %c0_i32 = arith.constant 0 : i32
    %c0_i32_0 = arith.constant 0 : i32
    %c0_i32_1 = arith.constant 0 : i32
    return %c0_i32, %c0_i32_0 : i32, i32
  }
  func.func @transform_5(%arg0: i32, %arg1: i32) -> (i32, i32) {
    %c0_i32 = arith.constant 0 : i32
    %c0_i32_0 = arith.constant 0 : i32
    return %arg0, %c0_i32 : i32, i32
  }
}

</mosaic_0001>

<bundles_post_ra>
// kernel: tpu_custom_call.1
= control target key start
LH: loop header
LB: loop body
LE: loop exit
PB: predicated region body
PF: predicated region fallthrough
CT: control target
= control target key end

     0   :  { %vm136_vm0 = vcmask 261120   ;;  %s1671_s0 = inlined_call_operand.vmem [shape: f32[256,32], index: 0, kind: input, shape index: {}]   ;;  %s1672_s1 = inlined_call_operand.vmem [shape: bf16[32,128], index: 1, kind: input, shape index: {}]   ;;  %s1673_s2 = inlined_call_operand.vmem [shape: f32[1,128], index: 2, kind: input, shape index: {}]   ;;  %s1674_s3 = inlined_call_operand.vmem [shape: bf16[128,128], index: 3, kind: input, shape index: {}]   ;;  %s1675_s4 = inlined_call_operand.vmem [shape: f32[1,128], index: 4, kind: input, shape index: {}]   ;;  %s1676_s5 = inlined_call_operand.hbm [shape: f32[256,128], index: 5, kind: output, shape index: {}]  }
   0x1   :  { %v1163_v0 = vld [vmem:[%s1672_s1 + $0x8] sm:$0xff]   ;;  %v1164_v1 = vld [vmem:[%s1672_s1] sm:$0xff]   ;;  %v67_v5 = vld [vmem:[%s1671_s0 + $0x10] sm:$0xff] }
   0x2   :  { %1060 = vmatprep.subr.bf16.mxu0 %v1163_v0  ;;  %v65_v2 = vld [vmem:[%s1671_s0] sm:$0xff]  ;;  %v66_v3 = vld [vmem:[%s1671_s0 + $0x8] sm:$0xff]  ;;  %v68_v6 = vld [vmem:[%s1671_s0 + $0x18] sm:$0xff] }
   0x3   :  { %1061 = vmatpush3.bf16.msra.mxu0 %v1163_v0  ;;  %v97_v4 = vpack.c.bf16 %v66_v3, %v65_v2  ;;  %v69_v7 = vld [vmem:[%s1671_s0 + $0x20] sm:$0xff]  ;;  %v70_v8 = vld [vmem:[%s1671_s0 + $0x28] sm:$0xff]  ;;  %v98_v9 = vpack.c.bf16 %v68_v6, %v67_v5  ;;  %v71_v11 = vld [vmem:[%s1671_s0 + $0x30] sm:$0xff] }
   0x4   :  { %1062 = vmatprep.subr.bf16.mxu0 %v1164_v1  ;;  %v99_v10 = vpack.c.bf16 %v70_v8, %v69_v7  ;;  %v72_v12 = vld [vmem:[%s1671_s0 + $0x38] sm:$0xff]  ;;  %v73_v13 = vld [vmem:[%s1671_s0 + $0x40] sm:$0xff]  ;;  %v74_v14 = vld [vmem:[%s1671_s0 + $0x48] sm:$0xff] }
   0x5   :  { %1064 = vmatprep.mubr.msk.bf16.mxu0 %vm136_vm0, %v97_v4  ;;  %v1165_v15 = vld [vmem:[%s1674_s3 + $0x38] sm:$0xff]   ;;  %v100_v16 = vpack.c.bf16 %v72_v12, %v71_v11  ;;  %v1166_v17 = vld [vmem:[%s1674_s3 + $0x30] sm:$0xff]   ;;  %v101_v18 = vpack.c.bf16 %v74_v14, %v73_v13  ;;  %v1167_v20 = vld [vmem:[%s1674_s3 + $0x28] sm:$0xff]  }
   0x6   :  { %1144 = vmatprep.subr.bf16.mxu1 %v1165_v15  ;;  %v75_v19 = vld [vmem:[%s1671_s0 + $0x50] sm:$0xff]  ;;  %v76_v21 = vld [vmem:[%s1671_s0 + $0x58] sm:$0xff]  ;;  %v77_v22 = vld [vmem:[%s1671_s0 + $0x60] sm:$0xff] }
   0x7   :  { %1063 = vmatpush3.bf16.msra.mxu0 %v1164_v1  ;;  %1152 = vmatpush3.bf16.msra.mxu1 %v1165_v15  ;;  %v78_v23 = vld [vmem:[%s1671_s0 + $0x68] sm:$0xff] }
   0x8   :  { %1096 = vmatprep.subr.bf16.mxu0 %v1165_v15  ;;  %1145 = vmatprep.subr.bf16.mxu1 %v1166_v17 }
   0xa   :  { %1065 = vmatmul.mubr.msk.bf16.vlgmr.msra.gmra.mxu0 %vm136_vm0, %v98_v9 }
   0xb   :  { %1068 = vmatprep.mubr.msk.bf16.mxu0 %vm136_vm0, %v99_v10  ;;  %1097 = vmatpush3.bf16.msra.mxu0 %v1165_v15 }
   0xc   :  { %1098 = vmatprep.subr.bf16.mxu0 %v1166_v17  ;;  %1153 = vmatpush3.bf16.msra.mxu1 %v1166_v17 }
   0xf   :  { %1099 = vmatpush3.bf16.msra.mxu0 %v1166_v17 }
  0x12   :  { %1069 = vmatmul.mubr.msk.bf16.gmra.mxu0 %vm136_vm0, %v100_v16 }
  0x13   :  { %1072 = vmatprep.mubr.msk.bf16.mxu0 %vm136_vm0, %v101_v18 }
  0x14   :  { %10 = vsyncpa [#allocation4], 0  ;;  %1100 = vmatprep.subr.bf16.mxu0 %v1167_v20  ;;  %v1168_v24 = vld [vmem:[%s1674_s3 + $0x20] sm:$0xff]   ;;  %1146 = vmatprep.subr.bf16.mxu1 %v1167_v20  ;;  %v102_v25 = vpack.c.bf16 %v76_v21, %v75_v19  ;;  %v103_v26 = vpack.c.bf16 %v78_v23, %v77_v22  ;;  %v1169_v27 = vld [vmem:[%s1674_s3 + $0x18] sm:$0xff]  }
  0x15   :  { %1101 = vmatpush3.bf16.msra.mxu0 %v1167_v20  ;;  %1154 = vmatpush3.bf16.msra.mxu1 %v1167_v20  ;;  %v79_v28 = vld [vmem:[%s1671_s0 + $0x70] sm:$0xff]  ;;  %v80_v29 = vld [vmem:[%s1671_s0 + $0x78] sm:$0xff]  ;;  %v81_v30 = vld [vmem:[%s1671_s0 + $0x80] sm:$0xff] }
  0x16   :  { %1102 = vmatprep.subr.bf16.mxu0 %v1168_v24  ;;  %1147 = vmatprep.subr.bf16.mxu1 %v1168_v24  ;;  %v82_v31 = vld [vmem:[%s1671_s0 + $0x88] sm:$0xff]  ;;  %v1170_v32 = vld [vmem:[%s1674_s3 + $0x10] sm:$0xff]   ;;  %v104_v33 = vpack.c.bf16 %v80_v29, %v79_v28  ;;  %v84_v36 = vld [vmem:[%s1671_s0 + $0x98] sm:$0xff] }
  0x17   :  { %v105_v34 = vpack.c.bf16 %v82_v31, %v81_v30  ;;  %v83_v35 = vld [vmem:[%s1671_s0 + $0x90] sm:$0xff]  ;;  %v85_v37 = vld [vmem:[%s1671_s0 + $0xa0] sm:$0xff]  ;;  %v86_v38 = vld [vmem:[%s1671_s0 + $0xa8] sm:$0xff] }
  0x18   :  { %v106_v39 = vpack.c.bf16 %v84_v36, %v83_v35  ;;  %v107_v40 = vpack.c.bf16 %v86_v38, %v85_v37  ;;  %v87_v41 = vld [vmem:[%s1671_s0 + $0xb0] sm:$0xff]  ;;  %v88_v42 = vld [vmem:[%s1671_s0 + $0xb8] sm:$0xff]  ;;  %v89_v43 = vld [vmem:[%s1671_s0 + $0xc0] sm:$0xff] }
  0x19   :  { %1103 = vmatpush3.bf16.msra.mxu0 %v1168_v24  ;;  %1155 = vmatpush3.bf16.msra.mxu1 %v1168_v24  ;;  %v90_v44 = vld [vmem:[%s1671_s0 + $0xc8] sm:$0xff]  ;;  %v108_v45 = vpack.c.bf16 %v88_v42, %v87_v41  ;;  %v91_v47 = vld [vmem:[%s1671_s0 + $0xd0] sm:$0xff]  ;;  %v92_v48 = vld [vmem:[%s1671_s0 + $0xd8] sm:$0xff] }
  0x1a   :  { %1073 = vmatmul.mubr.msk.bf16.gmra.mxu0 %vm136_vm0, %v102_v25  ;;  %1104 = vmatprep.subr.bf16.mxu0 %v1169_v27  ;;  %v109_v46 = vpack.c.bf16 %v90_v44, %v89_v43  ;;  %v93_v49 = vld [vmem:[%s1671_s0 + $0xe0] sm:$0xff]  ;;  %v94_v50 = vld [vmem:[%s1671_s0 + $0xe8] sm:$0xff]  ;;  %v110_v51 = vpack.c.bf16 %v92_v48, %v91_v47  ;;  %v95_v53 = vld [vmem:[%s1671_s0 + $0xf0] sm:$0xff] }
  0x1b   :  { %1076 = vmatprep.mubr.msk.bf16.mxu0 %vm136_vm0, %v103_v26  ;;  %1148 = vmatprep.subr.bf16.mxu1 %v1169_v27  ;;  %v111_v52 = vpack.c.bf16 %v94_v50, %v93_v49  ;;  %v96_v54 = vld [vmem:[%s1671_s0 + $0xf8] sm:$0xff]  ;;  %v1171_v56 = vld [vmem:[%s1674_s3 + $0x8] sm:$0xff]   ;;  %v1172_v57 = vld [vmem:[%s1674_s3] sm:$0xff]  }
  0x1c   :  { %v112_v55 = vpack.c.bf16 %v96_v54, %v95_v53  ;;  %v1437_v60 = vld [vmem:[%s1673_s2] ss:$0 sm:$0xff] }
  0x1d   :  { %1105 = vmatpush3.bf16.msra.mxu0 %v1169_v27  ;;  %1156 = vmatpush3.bf16.msra.mxu1 %v1169_v27 }
  0x1e   :  { %1106 = vmatprep.subr.bf16.mxu0 %v1170_v32  ;;  %1149 = vmatprep.subr.bf16.mxu1 %v1170_v32 }
  0x21   :  { %1107 = vmatpush3.bf16.msra.mxu0 %v1170_v32  ;;  %1157 = vmatpush3.bf16.msra.mxu1 %v1170_v32 }
  0x22   :  { %1077 = vmatmul.mubr.msk.bf16.gmra.mxu0 %vm136_vm0, %v104_v33  ;;  %1108 = vmatprep.subr.bf16.mxu0 %v1171_v56 }
  0x23   :  { %1080 = vmatprep.mubr.msk.bf16.mxu0 %vm136_vm0, %v105_v34  ;;  %1150 = vmatprep.subr.bf16.mxu1 %v1171_v56 }
  0x25   :  { %1109 = vmatpush3.bf16.msra.mxu0 %v1171_v56  ;;  %1158 = vmatpush3.bf16.msra.mxu1 %v1171_v56 }
  0x26   :  { %1110 = vmatprep.subr.bf16.mxu0 %v1172_v57  ;;  %1151 = vmatprep.subr.bf16.mxu1 %v1172_v57 }
  0x29   :  { %1111 = vmatpush3.bf16.msra.mxu0 %v1172_v57  ;;  %1159 = vmatpush3.bf16.msra.mxu1 %v1172_v57 }
  0x2a   :  { %1081 = vmatmul.mubr.msk.bf16.gmra.mxu0 %vm136_vm0, %v106_v39 }
  0x2b   :  { %1084 = vmatprep.mubr.msk.bf16.mxu0 %vm136_vm0, %v107_v40 }
  0x32   :  { %1085 = vmatmul.mubr.msk.bf16.gmra.mxu0 %vm136_vm0, %v108_v45 }
  0x33   :  { %1088 = vmatprep.mubr.msk.bf16.mxu0 %vm136_vm0, %v109_v46 }
  0x3a   :  { %1089 = vmatmul.mubr.msk.bf16.gmra.mxu0 %vm136_vm0, %v110_v51 }
  0x3b   :  { %1092 = vmatprep.mubr.msk.bf16.mxu0 %vm136_vm0, %v111_v52 }
  0x42   :  { %1093 = vmatmul.mubr.msk.bf16.gmra.mxu0 %vm136_vm0, %v112_v55 }
  0xca   :  { %v1066_v58 = vpop.f32.mrf.mxu0 }
  0xcb   :  { %v228_v0 = vadd.f32 %v1066_v58, %v1437_v60 }
  0xcc   :  { %v219_v59 = vpop.f32.mrf.mxu0 }
  0xcd   :  { %v220_v62 = vadd.f32 %v1437_v60, %v219_v59  ;;  %v348_v7 = vmax.f32 %v228_v0, 0.0 }
  0xce   :  { %v1067_v61 = vpop.f32.mrf.mxu0 }
  0xcf   :  { %v231_v63 = vadd.f32 %v1067_v61, %v1437_v60  ;;  %v346_v5 = vmax.f32 %v220_v62, 0.0 }
  0xd0   :  { %v222_v1 = vpop.f32.mrf.mxu0 }
  0xd1   :  { %v223_v2 = vadd.f32 %v1437_v60, %v222_v1  ;;  %v349_v3 = vmax.f32 %v231_v63, 0.0 }
  0xd2   :  { %v1070_v4 = vpop.f32.mrf.mxu0 }
  0xd3   :  { %v347_v6 = vmax.f32 %v223_v2, 0.0  ;;  %v411_v10 = vpack.c.bf16 %v349_v3, %v348_v7  ;;  %v244_v14 = vadd.f32 %v1070_v4, %v1437_v60 }
  0xd4   :  { %v235_v8 = vpop.f32.mrf.mxu0 }
  0xd5   :  { %v410_v9 = vpack.c.bf16 %v347_v6, %v346_v5  ;;  %v236_v12 = vadd.f32 %v1437_v60, %v235_v8  ;;  %v352_v21 = vmax.f32 %v244_v14, 0.0 }
  0xd6   :  { %v1071_v11 = vpop.f32.mrf.mxu0 }
  0xd7   :  { %v247_v13 = vadd.f32 %v1071_v11, %v1437_v60  ;;  %1112 = vmatprep.mubr.bf16.mxu0 %v410_v9  ;;  %v350_v19 = vmax.f32 %v236_v12, 0.0 }
  0xd8   :  { %v238_v15 = vpop.f32.mrf.mxu0  ;;  %1113 = vmatmul.mubr.bf16.vlgmr.msra.gmra.mxu0 %v411_v10 }
  0xd9   :  { %v239_v16 = vadd.f32 %v1437_v60, %v238_v15  ;;  %v353_v17 = vmax.f32 %v247_v13, 0.0 }
  0xda   :  { %v1074_v18 = vpop.f32.mrf.mxu0 }
  0xdb   :  { %v351_v20 = vmax.f32 %v239_v16, 0.0  ;;  %v413_v24 = vpack.c.bf16 %v353_v17, %v352_v21  ;;  %v260_v28 = vadd.f32 %v1074_v18, %v1437_v60 }
  0xdc   :  { %v251_v22 = vpop.f32.mrf.mxu0 }
  0xdd   :  { %v412_v23 = vpack.c.bf16 %v351_v20, %v350_v19  ;;  %v252_v26 = vadd.f32 %v1437_v60, %v251_v22  ;;  %v356_v35 = vmax.f32 %v260_v28, 0.0 }
  0xde   :  { %v1075_v25 = vpop.f32.mrf.mxu0 }
  0xdf   :  { %v263_v27 = vadd.f32 %v1075_v25, %v1437_v60  ;;  %1116 = vmatprep.mubr.bf16.mxu1 %v412_v23  ;;  %v354_v33 = vmax.f32 %v252_v26, 0.0 }
  0xe0   :  { %v254_v29 = vpop.f32.mrf.mxu0  ;;  %1117 = vmatmul.mubr.bf16.vlgmr.msra.gmra.mxu1 %v413_v24 }
  0xe1   :  { %v255_v30 = vadd.f32 %v1437_v60, %v254_v29  ;;  %v357_v31 = vmax.f32 %v263_v27, 0.0 }
  0xe2   :  { %v1078_v32 = vpop.f32.mrf.mxu0 }
  0xe3   :  { %v355_v34 = vmax.f32 %v255_v30, 0.0  ;;  %v415_v38 = vpack.c.bf16 %v357_v31, %v356_v35  ;;  %v276_v42 = vadd.f32 %v1078_v32, %v1437_v60 }
  0xe4   :  { %v267_v36 = vpop.f32.mrf.mxu0 }
  0xe5   :  { %v414_v37 = vpack.c.bf16 %v355_v34, %v354_v33  ;;  %v268_v40 = vadd.f32 %v1437_v60, %v267_v36  ;;  %v360_v49 = vmax.f32 %v276_v42, 0.0 }
  0xe6   :  { %v1079_v39 = vpop.f32.mrf.mxu0 }
  0xe7   :  { %v279_v41 = vadd.f32 %v1079_v39, %v1437_v60  ;;  %1120 = vmatprep.mubr.bf16.mxu1 %v414_v37  ;;  %v358_v47 = vmax.f32 %v268_v40, 0.0 }
  0xe8   :  { %v270_v43 = vpop.f32.mrf.mxu0  ;;  %1121 = vmatmul.mubr.bf16.gmra.mxu1 %v415_v38 }
  0xe9   :  { %v271_v44 = vadd.f32 %v1437_v60, %v270_v43  ;;  %v361_v45 = vmax.f32 %v279_v41, 0.0 }
  0xea   :  { %v1082_v46 = vpop.f32.mrf.mxu0 }
  0xeb   :  { %v359_v48 = vmax.f32 %v271_v44, 0.0  ;;  %v417_v52 = vpack.c.bf16 %v361_v45, %v360_v49  ;;  %v292_v56 = vadd.f32 %v1082_v46, %v1437_v60  ;;  %v1474_v44 = vld [vmem:[%s1675_s4] ss:$0 sm:$0xff]  ;;  %s1259_s4 = smov [#allocation3]  }
  0xec   :  { %v283_v50 = vpop.f32.mrf.mxu0  ;;  %s979_s25 = sshll.u32 %s1259_s4, 4  ;;  %s980_s25 = int_to_ptr.vmem [resolvable:$true] %s979_s25 }
  0xed   :  { %v416_v51 = vpack.c.bf16 %v359_v48, %v358_v47  ;;  %v284_v54 = vadd.f32 %v1437_v60, %v283_v50  ;;  %v364_v0 = vmax.f32 %v292_v56, 0.0  ;;  %s1237_s26 = scalar_lea.vmem %s980_s25, 4096  ;;  %p1242_p1 = scmp.lt.s32.totalorder %s980_s25, %s980_s25 }
  0xee   :  { %v1083_v53 = vpop.f32.mrf.mxu0  ;;  %p1238_p0 = scmp.ne.s32.totalorder %s980_s25, %s1237_s26  ;;  %p1243_p2 = scmp.lt.s32.totalorder %s1237_s26, %s1237_s26 }
  0xef   :  { %v295_v55 = vadd.f32 %v1083_v53, %v1437_v60  ;;  %1124 = vmatprep.mubr.bf16.mxu1 %v416_v51  ;;  %v362_v62 = vmax.f32 %v284_v54, 0.0 }
  0xf0   :  { %v286_v57 = vpop.f32.mrf.mxu0  ;;  %1125 = vmatmul.mubr.bf16.gmra.mxu1 %v417_v52  ;;  %p1244_p3 = por %p1243_p2, %p1242_p1 }
  0xf1   :  { %v287_v58 = vadd.f32 %v1437_v60, %v286_v57  ;;  %v365_v59 = vmax.f32 %v295_v55, 0.0 }
  0xf2   :  { %v1086_v61 = vpop.f32.mrf.mxu0  ;;  %p1245_p4 = pnand %p1244_p3, %p1238_p0 }
  0xf3   :  { %v363_v63 = vmax.f32 %v287_v58, 0.0  ;;  %v419_v3 = vpack.c.bf16 %v365_v59, %v364_v0  ;;  %v308_v7 = vadd.f32 %v1086_v61, %v1437_v60 }
  0xf4   :  { %v299_v1 = vpop.f32.mrf.mxu0 }
  0xf5   :  { %v418_v2 = vpack.c.bf16 %v363_v63, %v362_v62  ;;  %v300_v5 = vadd.f32 %v1437_v60, %v299_v1  ;;  %v368_v14 = vmax.f32 %v308_v7, 0.0 }
  0xf6   :  { %v1087_v4 = vpop.f32.mrf.mxu0 }
  0xf7   :  { %v311_v6 = vadd.f32 %v1087_v4, %v1437_v60  ;;  %1128 = vmatprep.mubr.bf16.mxu1 %v418_v2  ;;  %v366_v12 = vmax.f32 %v300_v5, 0.0 }
  0xf8   :  { %v302_v8 = vpop.f32.mrf.mxu0  ;;  %1129 = vmatmul.mubr.bf16.gmra.mxu1 %v419_v3 }
  0xf9   :  { %v303_v9 = vadd.f32 %v1437_v60, %v302_v8  ;;  %v369_v10 = vmax.f32 %v311_v6, 0.0 }
  0xfa   :  { %v1090_v11 = vpop.f32.mrf.mxu0 }
  0xfb   :  { %v367_v13 = vmax.f32 %v303_v9, 0.0  ;;  %v421_v17 = vpack.c.bf16 %v369_v10, %v368_v14  ;;  %v324_v21 = vadd.f32 %v1090_v11, %v1437_v60 }
  0xfc   :  { %v315_v15 = vpop.f32.mrf.mxu0 }
  0xfd   :  { %v420_v16 = vpack.c.bf16 %v367_v13, %v366_v12  ;;  %v316_v19 = vadd.f32 %v1437_v60, %v315_v15  ;;  %v372_v28 = vmax.f32 %v324_v21, 0.0 }
  0xfe   :  { %v1091_v18 = vpop.f32.mrf.mxu0 }
  0xff   :  { %v327_v20 = vadd.f32 %v1091_v18, %v1437_v60  ;;  %1132 = vmatprep.mubr.bf16.mxu1 %v420_v16  ;;  %v370_v26 = vmax.f32 %v316_v19, 0.0 }
 0x100   :  { %v318_v22 = vpop.f32.mrf.mxu0  ;;  %1133 = vmatmul.mubr.bf16.gmra.mxu1 %v421_v17 }
 0x101   :  { %v319_v23 = vadd.f32 %v1437_v60, %v318_v22  ;;  %v373_v24 = vmax.f32 %v327_v20, 0.0 }
 0x102   :  { %v1094_v25 = vpop.f32.mrf.mxu0 }
 0x103   :  { %v371_v27 = vmax.f32 %v319_v23, 0.0  ;;  %v423_v31 = vpack.c.bf16 %v373_v24, %v372_v28  ;;  %v340_v35 = vadd.f32 %v1094_v25, %v1437_v60 }
 0x104   :  { %v331_v29 = vpop.f32.mrf.mxu0 }
 0x105   :  { %v422_v30 = vpack.c.bf16 %v371_v27, %v370_v26  ;;  %v332_v33 = vadd.f32 %v1437_v60, %v331_v29  ;;  %v376_v41 = vmax.f32 %v340_v35, 0.0 }
 0x106   :  { %v1095_v32 = vpop.f32.mrf.mxu0 }
 0x107   :  { %v343_v34 = vadd.f32 %v1095_v32, %v1437_v60  ;;  %1136 = vmatprep.mubr.bf16.mxu1 %v422_v30  ;;  %v374_v39 = vmax.f32 %v332_v33, 0.0 }
 0x108   :  { %v334_v36 = vpop.f32.mrf.mxu0  ;;  %1137 = vmatmul.mubr.bf16.gmra.mxu1 %v423_v31 }
 0x109   :  { %v335_v37 = vadd.f32 %v1437_v60, %v334_v36  ;;  %v377_v38 = vmax.f32 %v343_v34, 0.0 }
 0x10b   :  { %v375_v40 = vmax.f32 %v335_v37, 0.0  ;;  %v425_v43 = vpack.c.bf16 %v377_v38, %v376_v41 }
 0x10d   :  { %v424_v42 = vpack.c.bf16 %v375_v40, %v374_v39 }
 0x10f   :  { %1140 = vmatprep.mubr.bf16.mxu1 %v424_v42 }
 0x110   :  { %1141 = vmatmul.mubr.bf16.gmra.mxu1 %v425_v43 }
 0x198   :  { %v1114_v45 = vpop.f32.mrf.mxu0 }
 0x199   :  { %v1477_v46 = vadd.f32 %v1114_v45, %v1474_v44 }
 0x19a   :  { %v524_v47 = vpop.f32.mrf.mxu0 }
 0x19b   :  { %v1480_v60 = vadd.f32 %v1474_v44, %v524_v47  ;;  %v752_v48 = vmul.f32 %v1477_v46, %v1477_v46 }
 0x19c   :  { %v1115_v49 = vpop.f32.mrf.mxu0 }
 0x19d   :  { %v1485_v50 = vadd.f32 %v1115_v49, %v1474_v44  ;;  %786 = vadd.xlane.f32.xlu1 %v752_v48  ;;  %v750_v51 = vmul.f32 %v1480_v60, %v1480_v60 }
 0x19e   :  { %v527_v52 = vpop.f32.mrf.mxu0 }
 0x19f   :  { %v1490_v53 = vadd.f32 %v1474_v44, %v527_v52  ;;  %782 = vadd.xlane.f32.xlu0 %v750_v51  ;;  %v753_v54 = vmul.f32 %v1485_v50, %v1485_v50 }
 0x1a0   :  { %v1118_v55 = vpop.f32.mrf.mxu1 }
 0x1a1   :  { %v1495_v56 = vadd.f32 %v1118_v55, %v1474_v44  ;;  %788 = vadd.xlane.f32.xlu1 %v753_v54  ;;  %v751_v57 = vmul.f32 %v1490_v53, %v1490_v53 }
 0x1a2   :  { %v540_v58 = vpop.f32.mrf.mxu1 }
 0x1a3   :  { %784 = vadd.xlane.f32.xlu0 %v751_v57  ;;  %v1500_v61 = vadd.f32 %v1474_v44, %v540_v58  ;;  %v756_v63 = vmul.f32 %v1495_v56, %v1495_v56 }
 0x1a4   :  { %v1119_v59 = vpop.f32.mrf.mxu1 }
 0x1a5   :  { %v1503_v62 = vadd.f32 %v1119_v59, %v1474_v44  ;;  %v754_v5 = vmul.f32 %v1500_v61, %v1500_v61 }
 0x1a6   :  { %v543_v0 = vpop.f32.mrf.mxu1 }
 0x1a7   :  { %v1508_v1 = vadd.f32 %v1474_v44, %v543_v0  ;;  %794 = vadd.xlane.f32.xlu0 %v756_v63  ;;  %v757_v2 = vmul.f32 %v1503_v62, %v1503_v62 }
 0x1a8   :  { %v1122_v3 = vpop.f32.mrf.mxu1 }
 0x1a9   :  { %v1513_v4 = vadd.f32 %v1122_v3, %v1474_v44  ;;  %796 = vadd.xlane.f32.xlu1 %v757_v2  ;;  %v755_v7 = vmul.f32 %v1508_v1, %v1508_v1 }
 0x1aa   :  { %v556_v6 = vpop.f32.mrf.mxu1 }
 0x1ab   :  { %790 = vadd.xlane.f32.xlu0 %v754_v5  ;;  %v1520_v9 = vadd.f32 %v1474_v44, %v556_v6  ;;  %v760_v11 = vmul.f32 %v1513_v4, %v1513_v4 }
 0x1ac   :  { %v1123_v8 = vpop.f32.mrf.mxu1 }
 0x1ad   :  { %v1523_v10 = vadd.f32 %v1123_v8, %v1474_v44  ;;  %792 = vadd.xlane.f32.xlu1 %v755_v7  ;;  %v758_v17 = vmul.f32 %v1520_v9, %v1520_v9 }
 0x1ae   :  { %v559_v12 = vpop.f32.mrf.mxu1 }
 0x1af   :  { %v1528_v13 = vadd.f32 %v1474_v44, %v559_v12  ;;  %802 = vadd.xlane.f32.xlu0 %v760_v11  ;;  %v761_v14 = vmul.f32 %v1523_v10, %v1523_v10 }
 0x1b0   :  { %v1126_v15 = vpop.f32.mrf.mxu1 }
 0x1b1   :  { %v1533_v16 = vadd.f32 %v1126_v15, %v1474_v44  ;;  %804 = vadd.xlane.f32.xlu1 %v761_v14  ;;  %v759_v19 = vmul.f32 %v1528_v13, %v1528_v13 }
 0x1b2   :  { %v572_v18 = vpop.f32.mrf.mxu1 }
 0x1b3   :  { %798 = vadd.xlane.f32.xlu0 %v758_v17  ;;  %v1540_v21 = vadd.f32 %v1474_v44, %v572_v18  ;;  %v764_v23 = vmul.f32 %v1533_v16, %v1533_v16 }
 0x1b4   :  { %v1127_v20 = vpop.f32.mrf.mxu1 }
 0x1b5   :  { %v1543_v22 = vadd.f32 %v1127_v20, %v1474_v44  ;;  %800 = vadd.xlane.f32.xlu1 %v759_v19  ;;  %v762_v29 = vmul.f32 %v1540_v21, %v1540_v21 }
 0x1b6   :  { %v575_v24 = vpop.f32.mrf.mxu1 }
 0x1b7   :  { %v1548_v25 = vadd.f32 %v1474_v44, %v575_v24  ;;  %810 = vadd.xlane.f32.xlu0 %v764_v23  ;;  %v765_v26 = vmul.f32 %v1543_v22, %v1543_v22 }
 0x1b8   :  { %v1130_v27 = vpop.f32.mrf.mxu1 }
 0x1b9   :  { %v1553_v28 = vadd.f32 %v1130_v27, %v1474_v44  ;;  %812 = vadd.xlane.f32.xlu1 %v765_v26  ;;  %v763_v31 = vmul.f32 %v1548_v25, %v1548_v25 }
 0x1ba   :  { %v588_v30 = vpop.f32.mrf.mxu1 }
 0x1bb   :  { %806 = vadd.xlane.f32.xlu0 %v762_v29  ;;  %v1560_v33 = vadd.f32 %v1474_v44, %v588_v30  ;;  %v768_v35 = vmul.f32 %v1553_v28, %v1553_v28 }
 0x1bc   :  { %v1131_v32 = vpop.f32.mrf.mxu1 }
 0x1bd   :  { %v1563_v34 = vadd.f32 %v1131_v32, %v1474_v44  ;;  %808 = vadd.xlane.f32.xlu1 %v763_v31  ;;  %v766_v41 = vmul.f32 %v1560_v33, %v1560_v33 }
 0x1be   :  { %v591_v36 = vpop.f32.mrf.mxu1 }
 0x1bf   :  { %v1568_v37 = vadd.f32 %v1474_v44, %v591_v36  ;;  %818 = vadd.xlane.f32.xlu0 %v768_v35  ;;  %v769_v38 = vmul.f32 %v1563_v34, %v1563_v34 }
 0x1c0   :  { %v1134_v39 = vpop.f32.mrf.mxu1 }
 0x1c1   :  { %v1573_v40 = vadd.f32 %v1134_v39, %v1474_v44  ;;  %820 = vadd.xlane.f32.xlu1 %v769_v38  ;;  %v767_v43 = vmul.f32 %v1568_v37, %v1568_v37 }
 0x1c2   :  { %v604_v42 = vpop.f32.mrf.mxu1 }
 0x1c3   :  { %814 = vadd.xlane.f32.xlu0 %v766_v41  ;;  %v1580_v47 = vadd.f32 %v1474_v44, %v604_v42  ;;  %v772_v49 = vmul.f32 %v1573_v40, %v1573_v40 }
 0x1c4   :  { %v1135_v45 = vpop.f32.mrf.mxu1 }
 0x1c5   :  { %v1583_v48 = vadd.f32 %v1135_v45, %v1474_v44  ;;  %816 = vadd.xlane.f32.xlu1 %v767_v43  ;;  %v770_v58 = vmul.f32 %v1580_v47, %v1580_v47 }
 0x1c6   :  { %v607_v51 = vpop.f32.mrf.mxu1 }
 0x1c7   :  { %v1588_v52 = vadd.f32 %v1474_v44, %v607_v51  ;;  %826 = vadd.xlane.f32.xlu0 %v772_v49  ;;  %v773_v54 = vmul.f32 %v1583_v48, %v1583_v48 }
 0x1c8   :  { %v1138_v55 = vpop.f32.mrf.mxu1 }
 0x1c9   :  { %v1593_v57 = vadd.f32 %v1138_v55, %v1474_v44  ;;  %828 = vadd.xlane.f32.xlu1 %v773_v54  ;;  %v771_v63 = vmul.f32 %v1588_v52, %v1588_v52 }
 0x1ca   :  { %v620_v59 = vpop.f32.mrf.mxu1 }
 0x1cb   :  { %822 = vadd.xlane.f32.xlu0 %v770_v58  ;;  %v1600_v2 = vadd.f32 %v1474_v44, %v620_v59  ;;  %v776_v5 = vmul.f32 %v1593_v57, %v1593_v57 }
 0x1cc   :  { %v1139_v0 = vpop.f32.mrf.mxu1 }
 0x1cd   :  { %v1603_v3 = vadd.f32 %v1139_v0, %v1474_v44  ;;  %824 = vadd.xlane.f32.xlu1 %v771_v63  ;;  %v774_v12 = vmul.f32 %v1600_v2, %v1600_v2 }
 0x1ce   :  { %v623_v6 = vpop.f32.mrf.mxu1 }
 0x1cf   :  { %v1608_v7 = vadd.f32 %v1474_v44, %v623_v6  ;;  %834 = vadd.xlane.f32.xlu0 %v776_v5  ;;  %v777_v8 = vmul.f32 %v1603_v3, %v1603_v3 }
 0x1d0   :  { %v1142_v11 = vpop.f32.mrf.mxu1 }
 0x1d1   :  { %836 = vadd.xlane.f32.xlu1 %v777_v8  ;;  %v775_v17 = vmul.f32 %v1608_v7, %v1608_v7  ;;  %v1620_v19 = vadd.f32 %v1142_v11, %v1474_v44 }
 0x1d2   :  { %v636_v14 = vpop.f32.mrf.mxu1 }
 0x1d3   :  { %v1615_v15 = vadd.f32 %v1474_v44, %v636_v14  ;;  %830 = vadd.xlane.f32.xlu0 %v774_v12  ;;  %v780_v29 = vmul.f32 %v1620_v19, %v1620_v19 }
 0x1d4   :  { %v1143_v18 = vpop.f32.mrf.mxu1 }
 0x1d5   :  { %832 = vadd.xlane.f32.xlu1 %v775_v17  ;;  %v778_v20 = vmul.f32 %v1615_v15, %v1615_v15  ;;  %v1628_v26 = vadd.f32 %v1143_v18, %v1474_v44 }
 0x1d6   :  { %v639_v23 = vpop.f32.mrf.mxu1 }
 0x1d7   :  { %v1625_v24 = vadd.f32 %v1474_v44, %v639_v23  ;;  %838 = vadd.xlane.f32.xlu0 %v778_v20  ;;  %v781_v30 = vmul.f32 %v1628_v26, %v1628_v26 }
 0x1d9   :  { %v779_v27 = vmul.f32 %v1625_v24, %v1625_v24 }
 0x1db   :  { %840 = vadd.xlane.f32.xlu1 %v779_v27  ;;  %842 = vadd.xlane.f32.xlu0 %v780_v29 }
 0x1df   :  { %844 = vadd.xlane.f32.xlu1 %v781_v30 }
 0x226   :  { %v787_v31 = vpop.xlane.xlu1 %786 }
 0x227   :  { %v848_v32 = vmax.f32 %v787_v31, 1e-24 }
 0x228   :  { %v783_v35 = vpop.xlane.xlu0 %782 }
 0x229   :  { %1173 = vrsqrt.f32 %v848_v32  ;;  %v846_v36 = vmax.f32 %v783_v35, 1e-24 }
 0x22a   :  { %v789_v38 = vpop.xlane.xlu1 %788 }
 0x22b   :  { %1175 = vrsqrt.f32 %v846_v36  ;;  %v849_v44 = vmax.f32 %v789_v38, 1e-24 }
 0x22c   :  { %v785_v39 = vpop.xlane.xlu0 %784 }
 0x22d   :  { %1177 = vrsqrt.f32 %v849_v44  ;;  %v847_v41 = vmax.f32 %v785_v39, 1e-24 }
 0x22f   :  { %1179 = vrsqrt.f32 %v847_v41 }
 0x230   :  { %v795_v42 = vpop.xlane.xlu0 %794 }
 0x231   :  { %v852_v43 = vmax.f32 %v795_v42, 1e-24 }
 0x232   :  { %v797_v45 = vpop.xlane.xlu1 %796 }
 0x233   :  { %1181 = vrsqrt.f32 %v852_v43  ;;  %v853_v49 = vmax.f32 %v797_v45, 1e-24 }
 0x234   :  { %v791_v51 = vpop.xlane.xlu0 %790 }
 0x235   :  { %1183 = vrsqrt.f32 %v853_v49  ;;  %v850_v54 = vmax.f32 %v791_v51, 1e-24 }
 0x236   :  { %v1174_v55 = vpop.eup %1173  ;;  %v793_v58 = vpop.xlane.xlu1 %792 }
 0x237   :  { %v912_v59 = vmul.f32 %v1174_v55, %v1477_v46  ;;  %1185 = vrsqrt.f32 %v850_v54  ;;  %v851_v63 = vmax.f32 %v793_v58, 1e-24 }
 0x238   :  { %v1176_v0 = vpop.eup %1175  ;;  %v803_v5 = vpop.xlane.xlu0 %802 }
 0x239   :  { %944 = vst [vmem:[#allocation3 + $0x10] sm:$0xff] %v912_v59  ;;  %v910_v6 = vmul.f32 %v1176_v0, %v1480_v60  ;;  %1187 = vrsqrt.f32 %v851_v63  ;;  %v856_v8 = vmax.f32 %v803_v5, 1e-24 }
 0x23a   :  { %v1178_v11 = vpop.eup %1177  ;;  %v805_v12 = vpop.xlane.xlu1 %804 }
 0x23b   :  { %942 = vst [vmem:[#allocation3] sm:$0xff] %v910_v6  ;;  %v913_v14 = vmul.f32 %v1178_v11, %v1485_v50  ;;  %1189 = vrsqrt.f32 %v856_v8  ;;  %v857_v17 = vmax.f32 %v805_v12, 1e-24 }
 0x23c   :  { %v1180_v18 = vpop.eup %1179  ;;  %v799_v20 = vpop.xlane.xlu0 %798 }
 0x23d   :  { %945 = vst [vmem:[#allocation3 + $0x18] sm:$0xff] %v913_v14  ;;  %v911_v46 = vmul.f32 %v1180_v18, %v1490_v53  ;;  %1191 = vrsqrt.f32 %v857_v17  ;;  %v854_v23 = vmax.f32 %v799_v20, 1e-24 }
 0x23e   :  { %v801_v27 = vpop.xlane.xlu1 %800 }
 0x23f   :  { %943 = vst [vmem:[#allocation3 + $0x8] sm:$0xff] %v911_v46  ;;  %1193 = vrsqrt.f32 %v854_v23  ;;  %v855_v60 = vmax.f32 %v801_v27, 1e-24 }
 0x240   :  { %v1182_v29 = vpop.eup %1181  ;;  %v811_v30 = vpop.xlane.xlu0 %810 }
 0x241   :  { %v916_v31 = vmul.f32 %v1182_v29, %v1495_v56  ;;  %1195 = vrsqrt.f32 %v855_v60  ;;  %v860_v32 = vmax.f32 %v811_v30, 1e-24 }
 0x242   :  { %v1184_v50 = vpop.eup %1183  ;;  %v813_v35 = vpop.xlane.xlu1 %812 }
 0x243   :  { %948 = vst [vmem:[#allocation3 + $0x30] sm:$0xff] %v916_v31  ;;  %v917_v36 = vmul.f32 %v1184_v50, %v1503_v62  ;;  %1197 = vrsqrt.f32 %v860_v32  ;;  %v861_v38 = vmax.f32 %v813_v35, 1e-24 }
 0x244   :  { %v1186_v53 = vpop.eup %1185  ;;  %v807_v44 = vpop.xlane.xlu0 %806 }
 0x245   :  { %949 = vst [vmem:[#allocation3 + $0x38] sm:$0xff] %v917_v36  ;;  %v914_v39 = vmul.f32 %v1186_v53, %v1500_v61  ;;  %1199 = vrsqrt.f32 %v861_v38  ;;  %v858_v41 = vmax.f32 %v807_v44, 1e-24 }
 0x246   :  { %v1188_v42 = vpop.eup %1187  ;;  %v809_v43 = vpop.xlane.xlu1 %808 }
 0x247   :  { %946 = vst [vmem:[#allocation3 + $0x20] sm:$0xff] %v914_v39  ;;  %v915_v56 = vmul.f32 %v1188_v42, %v1508_v1  ;;  %1201 = vrsqrt.f32 %v858_v41  ;;  %v859_v45 = vmax.f32 %v809_v43, 1e-24 }
 0x248   :  { %v1190_v49 = vpop.eup %1189  ;;  %v819_v51 = vpop.xlane.xlu0 %818 }
 0x249   :  { %947 = vst [vmem:[#allocation3 + $0x28] sm:$0xff] %v915_v56  ;;  %v920_v62 = vmul.f32 %v1190_v49, %v1513_v4  ;;  %1203 = vrsqrt.f32 %v859_v45  ;;  %v864_v54 = vmax.f32 %v819_v51, 1e-24 }
 0x24a   :  { %v1192_v55 = vpop.eup %1191  ;;  %v821_v58 = vpop.xlane.xlu1 %820 }
 0x24b   :  { %952 = vst [vmem:[#allocation3 + $0x50] sm:$0xff] %v920_v62  ;;  %v921_v61 = vmul.f32 %v1192_v55, %v1523_v10  ;;  %1205 = vrsqrt.f32 %v864_v54  ;;  %v865_v59 = vmax.f32 %v821_v58, 1e-24 }
 0x24c   :  { %v1194_v63 = vpop.eup %1193  ;;  %v815_v0 = vpop.xlane.xlu0 %814 }
 0x24d   :  { %953 = vst [vmem:[#allocation3 + $0x58] sm:$0xff] %v921_v61  ;;  %v918_v1 = vmul.f32 %v1194_v63, %v1520_v9  ;;  %1207 = vrsqrt.f32 %v865_v59  ;;  %v862_v5 = vmax.f32 %v815_v0, 1e-24 }
 0x24e   :  { %v1196_v6 = vpop.eup %1195  ;;  %v817_v8 = vpop.xlane.xlu1 %816 }
 0x24f   :  { %950 = vst [vmem:[#allocation3 + $0x40] sm:$0xff] %v918_v1  ;;  %v919_v4 = vmul.f32 %v1196_v6, %v1528_v13  ;;  %1209 = vrsqrt.f32 %v862_v5  ;;  %v863_v11 = vmax.f32 %v817_v8, 1e-24 }
 0x250   :  { %v1198_v12 = vpop.eup %1197  ;;  %v827_v14 = vpop.xlane.xlu0 %826 }
 0x251   :  { %951 = vst [vmem:[#allocation3 + $0x48] sm:$0xff] %v919_v4  ;;  %v924_v10 = vmul.f32 %v1198_v12, %v1533_v16  ;;  %1211 = vrsqrt.f32 %v863_v11  ;;  %v868_v17 = vmax.f32 %v827_v14, 1e-24 }
 0x252   :  { %v1200_v18 = vpop.eup %1199  ;;  %v829_v20 = vpop.xlane.xlu1 %828 }
 0x253   :  { %956 = vst [vmem:[#allocation3 + $0x70] sm:$0xff] %v924_v10  ;;  %v925_v9 = vmul.f32 %v1200_v18, %v1543_v22  ;;  %1213 = vrsqrt.f32 %v868_v17  ;;  %v869_v46 = vmax.f32 %v829_v20, 1e-24 }
 0x254   :  { %v1202_v23 = vpop.eup %1201  ;;  %v823_v27 = vpop.xlane.xlu0 %822 }
 0x255   :  { %957 = vst [vmem:[#allocation3 + $0x78] sm:$0xff] %v925_v9  ;;  %v922_v13 = vmul.f32 %v1202_v23, %v1540_v21  ;;  %1215 = vrsqrt.f32 %v869_v46  ;;  %v866_v60 = vmax.f32 %v823_v27, 1e-24 }
 0x256   :  { %v1204_v29 = vpop.eup %1203  ;;  %v825_v30 = vpop.xlane.xlu1 %824 }
 0x257   :  { %954 = vst [vmem:[#allocation3 + $0x60] sm:$0xff] %v922_v13  ;;  %v923_v16 = vmul.f32 %v1204_v29, %v1548_v25  ;;  %1217 = vrsqrt.f32 %v866_v60  ;;  %v867_v31 = vmax.f32 %v825_v30, 1e-24 }
 0x258   :  { %v1206_v32 = vpop.eup %1205  ;;  %v835_v50 = vpop.xlane.xlu0 %834 }
 0x259   :  { %955 = vst [vmem:[#allocation3 + $0x68] sm:$0xff] %v923_v16  ;;  %v928_v22 = vmul.f32 %v1206_v32, %v1553_v28  ;;  %1219 = vrsqrt.f32 %v867_v31  ;;  %v872_v35 = vmax.f32 %v835_v50, 1e-24 }
 0x25a   :  { %v1208_v36 = vpop.eup %1207  ;;  %v837_v38 = vpop.xlane.xlu1 %836 }
 0x25b   :  { %960 = vst [vmem:[#allocation3 + $0x90] sm:$0xff] %v928_v22  ;;  %v929_v21 = vmul.f32 %v1208_v36, %v1563_v34  ;;  %1221 = vrsqrt.f32 %v872_v35  ;;  %v873_v53 = vmax.f32 %v837_v38, 1e-24 }
 0x25c   :  { %v1210_v44 = vpop.eup %1209  ;;  %v831_v39 = vpop.xlane.xlu0 %830 }
 0x25d   :  { %961 = vst [vmem:[#allocation3 + $0x98] sm:$0xff] %v929_v21  ;;  %v926_v25 = vmul.f32 %v1210_v44, %v1560_v33  ;;  %1223 = vrsqrt.f32 %v873_v53  ;;  %v870_v41 = vmax.f32 %v831_v39, 1e-24 }
 0x25e   :  { %v1212_v42 = vpop.eup %1211  ;;  %v833_v43 = vpop.xlane.xlu1 %832 }
 0x25f   :  { %958 = vst [vmem:[#allocation3 + $0x80] sm:$0xff] %v926_v25  ;;  %v927_v28 = vmul.f32 %v1212_v42, %v1568_v37  ;;  %1225 = vrsqrt.f32 %v870_v41  ;;  %v871_v56 = vmax.f32 %v833_v43, 1e-24 }
 0x260   :  { %v1214_v45 = vpop.eup %1213  ;;  %v839_v49 = vpop.xlane.xlu0 %838 }
 0x261   :  { %959 = vst [vmem:[#allocation3 + $0x88] sm:$0xff] %v927_v28  ;;  %v932_v34 = vmul.f32 %v1214_v45, %v1573_v40  ;;  %1227 = vrsqrt.f32 %v871_v56  ;;  %v874_v51 = vmax.f32 %v839_v49, 1e-24 }
 0x262   :  { %v1216_v62 = vpop.eup %1215 }
 0x263   :  { %964 = vst [vmem:[#allocation3 + $0xb0] sm:$0xff] %v932_v34  ;;  %v933_v33 = vmul.f32 %v1216_v62, %v1583_v48  ;;  %1229 = vrsqrt.f32 %v874_v51 }
 0x264   :  { %v1218_v54 = vpop.eup %1217  ;;  %v841_v55 = vpop.xlane.xlu1 %840 }
 0x265   :  { %v843_v58 = vpop.xlane.xlu0 %842  ;;  %965 = vst [vmem:[#allocation3 + $0xb8] sm:$0xff] %v933_v33  ;;  %v930_v37 = vmul.f32 %v1218_v54, %v1580_v47  ;;  %v875_v61 = vmax.f32 %v841_v55, 1e-24 }
 0x266   :  { %v876_v59 = vmax.f32 %v843_v58, 1e-24  ;;  %v1220_v63 = vpop.eup %1219 }
 0x267   :  { %962 = vst [vmem:[#allocation3 + $0xa0] sm:$0xff] %v930_v37  ;;  %v931_v0 = vmul.f32 %v1220_v63, %v1588_v52  ;;  %1231 = vrsqrt.f32 %v875_v61 }
 0x268   :  { %v1222_v40 = vpop.eup %1221  ;;  %1233 = vrsqrt.f32 %v876_v59  ;;  %v845_v1 = vpop.xlane.xlu1 %844 }
 0x269   :  { %963 = vst [vmem:[#allocation3 + $0xa8] sm:$0xff] %v931_v0  ;;  %v936_v48 = vmul.f32 %v1222_v40, %v1593_v57  ;;  %v877_v5 = vmax.f32 %v845_v1, 1e-24 }
 0x26a   :  { %v1224_v6 = vpop.eup %1223 }
 0x26b   :  { %968 = vst [vmem:[#allocation3 + $0xd0] sm:$0xff] %v936_v48  ;;  %v937_v8 = vmul.f32 %v1224_v6, %v1603_v3  ;;  %1235 = vrsqrt.f32 %v877_v5 }
 0x26c   :  { %v1226_v47 = vpop.eup %1225 }
 0x26d   :  { %969 = vst [vmem:[#allocation3 + $0xd8] sm:$0xff] %v937_v8  ;;  %v934_v4 = vmul.f32 %v1226_v47, %v1600_v2 }
 0x26e   :  { %v1228_v11 = vpop.eup %1227 }
 0x26f   :  { %966 = vst [vmem:[#allocation3 + $0xc0] sm:$0xff] %v934_v4  ;;  %v935_v52 = vmul.f32 %v1228_v11, %v1608_v7 }
 0x270   :  { %v1230_v12 = vpop.eup %1229 }
 0x271   :  { %967 = vst [vmem:[#allocation3 + $0xc8] sm:$0xff] %v935_v52  ;;  %v938_v14 = vmul.f32 %v1230_v12, %v1615_v15 }
 0x273   :  { %970 = vst [vmem:[#allocation3 + $0xe0] sm:$0xff] %v938_v14 }
 0x274   :  { %v1232_v57 = vpop.eup %1231 }
 0x275   :  { %v1234_v10 = vpop.eup %1233  ;;  %v939_v17 = vmul.f32 %v1232_v57, %v1625_v24 }
 0x276   :  { %v940_v3 = vmul.f32 %v1234_v10, %v1620_v19 }
 0x277   :  { %971 = vst [vmem:[#allocation3 + $0xe8] sm:$0xff] %v939_v17 }
 0x278   :  { %v1236_v18 = vpop.eup %1235  ;;  %972 = vst [vmem:[#allocation3 + $0xf0] sm:$0xff] %v940_v3 }
 0x279   :  { %v941_v2 = vmul.f32 %v1236_v18, %v1628_v26 }
 0x27b   :  { %973 = vst [vmem:[#allocation3 + $0xf8] sm:$0xff] %v941_v2 }
 0x27c   :  { %1248 = shalt.err (!%p1245_p4)
}
 0x27d   :  { %s1260_s27 = smov 128   ;;  %s1261_s28 = smov 8  }
 0x27e   :  { %985 = dma.vmem_to_hbm [thread:$0]  %s980_s25, 4096, %s1676_s5, [#allocation4], %s1260_s27, %s1260_s27, %s1261_s28  }
 0x27f   :  { %1257 = dma.done.wait [#allocation4], 4096  }
 0x280   :  { %1258 = vsyncadd [#allocation4], 4294963200 }
 0x281   :  { %989 = vsyncpa [#allocation4], 1 }

</bundles_post_ra>
